<compile_context>
chip_gen: v5e
topology: v5e:2x2
jax: 0.10.0
libtpu: 0.0.40
codegen_flags: <defaults>
</compile_context>

<pallas_src>
import jax
import jax.numpy as jnp
from jax.experimental import pallas as pl
from jax.experimental.pallas import tpu as pltpu


def _round_up(x, m):
    return (x + m - 1) // m * m


# --------------------------- kernels ---------------------------------------

def _member_kernel_bias(x_ref, w_ref, b_ref, o_ref):
    # blocks: x (1, tm, K), w (1, K, N), b (1, 1, N), o (1, tm, N)
    x = x_ref[0].astype(w_ref.dtype)                       # cast inside kernel (VPU)
    acc = jnp.dot(x, w_ref[0], preferred_element_type=jnp.float32)   # MXU, f32 acc
    o_ref[0] = (acc + b_ref[0].astype(jnp.float32)).astype(o_ref.dtype)


def _member_kernel(x_ref, w_ref, o_ref):
    x = x_ref[0].astype(w_ref.dtype)
    acc = jnp.dot(x, w_ref[0], preferred_element_type=jnp.float32)
    o_ref[0] = acc.astype(o_ref.dtype)


def _shared_kernel_bias(x_ref, w_ref, b_ref, o_ref):
    # blocks: x (1, tm, K) read ONCE, w (E, K, N) + b (E, 1, N) resident (constant
    # index map), o (E, tm, N).  Static unroll over ensemble members.
    E = w_ref.shape[0]
    x = x_ref[0].astype(w_ref.dtype)
    for e in range(E):
        acc = jnp.dot(x, w_ref[e], preferred_element_type=jnp.float32)
        o_ref[e] = (acc + b_ref[e].astype(jnp.float32)).astype(o_ref.dtype)


def _shared_kernel(x_ref, w_ref, o_ref):
    E = w_ref.shape[0]
    x = x_ref[0].astype(w_ref.dtype)
    for e in range(E):
        acc = jnp.dot(x, w_ref[e], preferred_element_type=jnp.float32)
        o_ref[e] = acc.astype(o_ref.dtype)


# --------------------------- pallas wrapper ---------------------------------

def ensemble_matmul(x3, w, b=None, *, out_dtype=None, tm_max=1024,
                    vmem_budget_bytes=32 * 1024 * 1024):
    """x3: (E or 1, M, K), w: (E, K, N), b: (E, 1, N)|None -> (E, M, N).

    Returns None when the layer's weights don't fit the VMEM budget (caller
    falls back to XLA einsum)."""
    Ex, M, K = x3.shape
    E, Kw, N = w.shape
    assert Kw == K and Ex in (1, E)
    shared = (Ex == 1 and E > 1)
    out_dtype = jnp.dtype(out_dtype if out_dtype is not None else x3.dtype)

    x_e = x3.dtype.itemsize
    w_e = w.dtype.itemsize
    b_e = b.dtype.itemsize if b is not None else 0
    o_e = out_dtype.itemsize

    # Double-buffered VMEM footprint with the TRUE element sizes (bf16 weights = 2B).
    if shared:
        fixed = 2 * E * (K * N * w_e + N * b_e)        # all members resident
        per_row = 2 * (K * x_e + E * N * o_e)
    else:
        fixed = 2 * (K * N * w_e + N * b_e)            # one member resident
        per_row = 2 * (K * x_e + N * o_e)

    avail = vmem_budget_bytes - fixed
    if avail < 8 * per_row:
        # TODO(synk): tile N (and K with an f32 accumulator) for very large layers.
        return None

    # ---- M tile: no wrapper padding; pl.cdiv grid, Pallas masks the ragged tile.
    tm = min(tm_max, max(8, (avail // per_row) // 8 * 8))
    if M <= tm:
        tm, m_tiles = M, 1                              # single full-extent block
    else:
        m_tiles = pl.cdiv(M, tm)                        # last tile masked on store

    vmem_limit = int(min(48 * 1024 * 1024,              # headroom on v7x's 64 MiB
                         max(fixed + per_row * tm + (4 << 20), 32 * 1024 * 1024)))

    operands = [x3, w]
    if shared:
        grid = (m_tiles,)
        in_specs = [
            pl.BlockSpec((1, tm, K), lambda m: (0, m, 0)),
            # constant index map -> the whole (E,K,N) weight is DMA'd once
            pl.BlockSpec((E, K, N), lambda m: (0, 0, 0)),
        ]
        out_specs = pl.BlockSpec((E, tm, N), lambda m: (0, m, 0))
        kernel = _shared_kernel
        if b is not None:
            in_specs.append(pl.BlockSpec((E, 1, N), lambda m: (0, 0, 0)))
            operands.append(b)
            kernel = _shared_kernel_bias
        dims = ("parallel",)
    else:
        # e outer, m inner -> weight/bias block index constant along the inner axis
        # (fetched once per member, stays VMEM-resident across all M tiles).
        grid = (E, m_tiles)
        in_specs = [
            pl.BlockSpec((1, tm, K), lambda e, m: (e, m, 0)),
            pl.BlockSpec((1, K, N), lambda e, m: (e, 0, 0)),
        ]
        out_specs = pl.BlockSpec((1, tm, N), lambda e, m: (e, m, 0))
        kernel = _member_kernel
        if b is not None:
            in_specs.append(pl.BlockSpec((1, 1, N), lambda e, m: (e, 0, 0)))
            operands.append(b)
            kernel = _member_kernel_bias
        # Both axes independent; keep both "parallel" so the v7x megacore partitioner
        # can pick the large M axis (measured ~zero effect on single-TC v5e/v6e).
        dims = ("parallel", "parallel")

    return pl.pallas_call(
        kernel,
        out_shape=jax.ShapeDtypeStruct((E, M, N), out_dtype),
        grid=grid,
        in_specs=in_specs,
        out_specs=out_specs,
        compiler_params=pltpu.CompilerParams(
            dimension_semantics=dims,
            vmem_limit_bytes=vmem_limit),
    )(*operands)


# --------------------------- module port ------------------------------------

class EnsembleLinear:
    """JAX/Pallas port of the PyTorch EnsembleLinear module (forward only)."""

    # below this many MACs per ensemble member, XLA beats pallas_call overhead
    _PALLAS_MIN_WORK = 1 << 20

    def __init__(self, input_dim, output_dim, num_ensemble, bias=True,
                 desire_ndim=None, key=None, compute_dtype=None, out_dtype=None):
        self.use_bias = bias
        self.desire_ndim = desire_ndim
        self.num_ensemble = num_ensemble
        self.input_dim = input_dim
        self.output_dim = output_dim
        # compute_dtype: bf16 on v6e/v7x halves weight DMA / resident weight VMEM
        # and runs the MXU at native bf16 rate; cast happens ONCE here, not per call.
        self.compute_dtype = compute_dtype
        # out_dtype: pass bf16 when the consumer tolerates it (output bytes dominate
        # per-row HBM traffic at small K); default keeps the activation dtype.
        self.out_dtype = out_dtype
        if key is None:
            key = jax.random.PRNGKey(0)
        std = 1.0 / (2.0 * input_dim ** 0.5)
        # torch.nn.init.trunc_normal_ truncates at +/-2 absolute.
        self.weight = std * jax.random.truncated_normal(
            key, -2.0 / std, 2.0 / std,
            (num_ensemble, input_dim, output_dim), jnp.float32)
        self.bias = (jnp.zeros((num_ensemble, 1, output_dim), jnp.float32)
                     if bias else None)

        # Kernel-side parameters: pad output_dim to a multiple of 128 lanes so all
        # stores are full unmasked vregs; weights optionally stored in bf16. Bias is
        # kept f32 (negligible bytes, exact add).
        n_pad = _round_up(output_dim, 128)
        self._n_pad = n_pad
        w_k = self.weight
        b_k = self.bias
        if n_pad != output_dim:
            pad = ((0, 0), (0, 0), (0, n_pad - output_dim))
            w_k = jnp.pad(w_k, pad)
            b_k = jnp.pad(b_k, pad) if bias else None
        if compute_dtype is not None:
            w_k = w_k.astype(compute_dtype)
        self._w_kernel = w_k
        self._b_kernel = b_k

    # ---- core: (1 or E, M, K) -> (E, M, output_dim) ----
    def _matmul_flat(self, x3):
        M = x3.shape[1]
        out_dtype = self.out_dtype if self.out_dtype is not None else x3.dtype
        out = None
        if M * self.input_dim * self.output_dim >= self._PALLAS_MIN_WORK:
            out = ensemble_matmul(
                x3, self._w_kernel,
                self._b_kernel if self.use_bias else None,
                out_dtype=out_dtype)
        if out is None:
            # XLA fallback: tiny problems (pallas_call per-step overhead dominates)
            # or layers whose weights don't fit the VMEM budget.
            out = jnp.matmul(x3.astype(self.weight.dtype), self.weight)
            if self.use_bias:
                out = out + self.bias
            return out.astype(out_dtype)
        if self._n_pad != self.output_dim:
            out = out[..., :self.output_dim]   # fuses into the consumer under jit
        return out

    def __call__(self, x):
        E, N = self.num_ensemble, self.output_dim
        nd = x.ndim
        if nd == 2:
            # 'ij,bjk->bik' : x shared across members (no HBM broadcast of x)
            return self._matmul_flat(x[None])                          # (E, i, N)
        elif nd == 3:
            if (self.desire_ndim is None or self.desire_ndim == 3) and x.shape[0] == E:
                # 'bij,bjk->bik'
                return self._matmul_flat(x)                            # (E, i, N)
            # 'cij,bjk->bcik' : x shared
            c, i, j = x.shape
            out = self._matmul_flat(x.reshape(1, c * i, j))
            return out.reshape(E, c, i, N)
        elif nd == 4:
            if (self.desire_ndim is None or self.desire_ndim == 4) and x.shape[0] == E:
                # 'cbij,cjk->cbik'
                _, bdim, i, j = x.shape
                out = self._matmul_flat(x.reshape(E, bdim * i, j))
                return out.reshape(E, bdim, i, N)
            # 'cdij,bjk->bcdik' : x shared
            c, d, i, j = x.shape
            out = self._matmul_flat(x.reshape(1, c * d * i, j))
            return out.reshape(E, c, d, i, N)
        elif nd == 5:
            # 'bcdij,bjk->bcdik'
            bdim, c, d, i, j = x.shape
            assert bdim == E
            out = self._matmul_flat(x.reshape(E, c * d * i, j))
            return out.reshape(E, c, d, i, N)
        raise ValueError(f"unsupported input ndim {nd}")


# --------------------------- demo / checks ----------------------------------

if __name__ == "__main__":
    key = jax.random.PRNGKey(0)
    k_w, k_w2, k_a, k_b, k_c, k_d, k_e = jax.random.split(key, 7)

    # Pallas-path configuration (large enough to pass the einsum-fallback threshold)
    E, K, N, M = 4, 64, 48, 512          # N=48 exercises the lane padding to 128
    layer = EnsembleLinear(K, N, E, bias=True, key=k_w)
    W, B = layer.weight, layer.bias

    # (A) 3D per-member path: 'bij,bjk->bik'  (jitted so the lane-pad trim fuses)
    xa = jax.random.normal(k_a, (E, M, K), jnp.float32)
    fwd = jax.jit(layer.__call__)
    outa = jax.block_until_ready(fwd(xa))
    refa = jnp.einsum('bij,bjk->bik', xa, W) + B
    assert outa.shape == (E, M, N)
    assert jnp.allclose(outa, refa, atol=1e-3, rtol=1e-3)

    # (B) 2D shared-x path: 'ij,bjk->bik' (x read once; all member weights resident)
    xb = jax.random.normal(k_b, (M, K), jnp.float32)
    outb = jax.block_until_ready(layer(xb))
    refb = jnp.einsum('ij,bjk->bik', xb, W) + B
    assert outb.shape == (E, M, N)
    assert jnp.allclose(outb, refb, atol=1e-3, rtol=1e-3)

    # (C) 4D per-member path: 'cbij,cjk->cbik' (+ bias unsqueeze(1))
    xc = jax.random.normal(k_c, (E, 4, 128, K), jnp.float32)
    outc = jax.block_until_ready(layer(xc))
    refc = jnp.einsum('cbij,cjk->cbik', xc, W) + B[:, None]
    assert outc.shape == (E, 4, 128, N)
    assert jnp.allclose(outc, refc, atol=1e-3, rtol=1e-3)

    # (D) no-bias kernel path
    layer_nb = EnsembleLinear(K, N, E, bias=False, key=k_w2)
    outd = jax.block_until_ready(layer_nb(xa))
    refd = jnp.einsum('bij,bjk->bik', xa, layer_nb.weight)
    assert jnp.allclose(outd, refd, atol=1e-3, rtol=1e-3)

    # (E) tiny problem: XLA fallback, shared 3D branch 'cij,bjk->bcik'
    small = EnsembleLinear(32, 16, 3, bias=True, key=k_w2)
    xe = jax.random.normal(k_d, (2, 8, 32), jnp.float32)
    oute = jax.block_until_ready(small(xe))
    refe = jnp.einsum('cij,bjk->bcik', xe, small.weight) + small.bias[:, None]
    assert oute.shape == (3, 2, 8, 16)
    assert jnp.allclose(oute, refe, atol=1e-4, rtol=1e-4)

    # (F) bf16 weights stored at init (no per-call casts); f32 accumulation
    layer_bf16 = EnsembleLinear(K, N, E, bias=True, key=k_w,
                                compute_dtype=jnp.bfloat16)
    outf = jax.block_until_ready(layer_bf16(xa))
    assert jnp.allclose(outf, refa, atol=5e-2, rtol=5e-2)

    # (G) 4D shared-x branch: 'cdij,bjk->bcdik'
    xg = jax.random.normal(k_e, (2, 3, 128, K), jnp.float32)
    outg = jax.block_until_ready(layer(xg))
    refg = jnp.einsum('cdij,bjk->bcdik', xg, W) + B[:, None, None]
    assert outg.shape == (E, 2, 3, 128, N)
    assert jnp.allclose(outg, refg, atol=1e-3, rtol=1e-3)

    # (H) ragged M (M > tm, not a tile multiple): pl.cdiv grid + masked last tile
    xh = jax.random.normal(k_a, (E, 1100, K), jnp.float32)
    outh = jax.block_until_ready(layer(xh))
    refh = jnp.einsum('bij,bjk->bik', xh, W) + B
    assert outh.shape == (E, 1100, N)
    assert jnp.allclose(outh, refh, atol=1e-3, rtol=1e-3)

    print("KERNEL_OK")
</pallas_src>

<mosaic_0001>
module attributes {stable_mosaic.version = 11 : i64} {
  func.func @_member_kernel_bias(%arg0: i32, %arg1: i32, %arg2: memref<1x512x64xf32, #tpu.memory_space<vmem>>, %arg3: memref<1x64x128xf32, #tpu.memory_space<vmem>>, %arg4: memref<1x1x128xf32, #tpu.memory_space<vmem>>, %arg5: memref<1x512x128xf32, #tpu.memory_space<vmem>>) attributes {dimension_semantics = [#tpu.dimension_semantics<parallel>, #tpu.dimension_semantics<parallel>], iteration_bounds = array<i64: 4, 1>, scalar_prefetch = 0 : i64, scratch_operands = 0 : i64, tpu.core_type = #tpu.core_type<tc>, window_params = [{transform_indices = @transform_0, window_bounds = array<i64: 1, 512, 64>}, {transform_indices = @transform_1, window_bounds = array<i64: 1, 64, 128>}, {transform_indices = @transform_2, window_bounds = array<i64: 1, 1, 128>}, {transform_indices = @transform_3, window_bounds = array<i64: 1, 512, 128>}]} {
    %c0 = arith.constant 0 : index
    %c0_0 = arith.constant 0 : index
    %c0_1 = arith.constant 0 : index
    %0 = vector.load %arg2[%c0, %c0_0, %c0_1] : memref<1x512x64xf32, #tpu.memory_space<vmem>>, vector<1x512x64xf32>
    %1 = vector.shape_cast %0 : vector<1x512x64xf32> to vector<512x64xf32>
    %c0_2 = arith.constant 0 : index
    %c0_3 = arith.constant 0 : index
    %c0_4 = arith.constant 0 : index
    %2 = vector.load %arg3[%c0_2, %c0_3, %c0_4] : memref<1x64x128xf32, #tpu.memory_space<vmem>>, vector<1x64x128xf32>
    %3 = vector.shape_cast %2 : vector<1x64x128xf32> to vector<64x128xf32>
    %cst = arith.constant dense<0.000000e+00> : vector<512x128xf32>
    %4 = tpu.matmul %1, %3, %cst {dimension_numbers = #tpu.dot_dimension_numbers<[1], [0], [0], [1], [0, 0, 1, 1], [], []>} : vector<512x64xf32>, vector<64x128xf32>, vector<512x128xf32> -> vector<512x128xf32>
    %c0_5 = arith.constant 0 : index
    %c0_6 = arith.constant 0 : index
    %c0_7 = arith.constant 0 : index
    %5 = vector.load %arg4[%c0_5, %c0_6, %c0_7] : memref<1x1x128xf32, #tpu.memory_space<vmem>>, vector<1x1x128xf32>
    %6 = vector.shape_cast %5 : vector<1x1x128xf32> to vector<1x128xf32>
    %7 = vector.broadcast %6 : vector<1x128xf32> to vector<512x128xf32>
    %8 = arith.addf %4, %7 : vector<512x128xf32>
    %c0_8 = arith.constant 0 : index
    %c0_9 = arith.constant 0 : index
    %c0_10 = arith.constant 0 : index
    %9 = vector.load %arg5[%c0_8, %c0_9, %c0_10] : memref<1x512x128xf32, #tpu.memory_space<vmem>>, vector<1x512x128xf32>
    %10 = vector.shape_cast %9 : vector<1x512x128xf32> to vector<512x128xf32>
    %11 = vector.shape_cast %8 : vector<512x128xf32> to vector<1x512x128xf32>
    tpu.vector_store %arg5[%c0_8, %c0_9, %c0_10], %11 {strides = array<i32>} : memref<1x512x128xf32, #tpu.memory_space<vmem>>, vector<1x512x128xf32>,
    return
  }
  func.func @transform_0(%arg0: i32, %arg1: i32) -> (i32, i32, i32) {
    %c0_i32 = arith.constant 0 : i32
    %c0_i32_0 = arith.constant 0 : i32
    return %arg0, %arg1, %c0_i32 : i32, i32, i32
  }
  func.func @transform_1(%arg0: i32, %arg1: i32) -> (i32, i32, i32) {
    %c0_i32 = arith.constant 0 : i32
    %c0_i32_0 = arith.constant 0 : i32
    %c0_i32_1 = arith.constant 0 : i32
    return %arg0, %c0_i32, %c0_i32_0 : i32, i32, i32
  }
  func.func @transform_2(%arg0: i32, %arg1: i32) -> (i32, i32, i32) {
    %c0_i32 = arith.constant 0 : i32
    %c0_i32_0 = arith.constant 0 : i32
    %c0_i32_1 = arith.constant 0 : i32
    return %arg0, %c0_i32, %c0_i32_0 : i32, i32, i32
  }
  func.func @transform_3(%arg0: i32, %arg1: i32) -> (i32, i32, i32) {
    %c0_i32 = arith.constant 0 : i32
    %c0_i32_0 = arith.constant 0 : i32
    return %arg0, %arg1, %c0_i32 : i32, i32, i32
  }
}

</mosaic_0001>

<bundles_post_ra>
// kernel: a_call__.1
= control target key start
LH: loop header
LB: loop body
LE: loop exit
PB: predicated region body
PF: predicated region fallthrough
CT: control target
= control target key end

     0   :  { %s1067_s12 = smov 0   ;;  %s1069_s13 = smov 0   ;;  %s1392_s0 = inlined_call_operand.vmem [shape: f32[4,512,64], index: 0, kind: input, shape index: {}]   ;;  %s1393_s1 = inlined_call_operand.vmem [shape: f32[4,64,128], index: 1, kind: input, shape index: {}]   ;;  %s1394_s2 = inlined_call_operand.vmem [shape: f32[4,1,128], index: 2, kind: input, shape index: {}]   ;;  %s1395_s3 = inlined_call_operand.vmem [shape: f32[4,512,128], index: 3, kind: output, shape index: {}]  }
   0x1   :  { %s1071_s14 = smov 0  }
   0x2 LB: > { %s25_s15 = sadd.s32 1, %s1041_s13  ;;  %p898_p0 = scmp.ge.s32.totalorder %s1045_s14, 1  ;;  %s1045_s14 = sphi %s1071_s14, %s13_s14   ;;  %s1041_s13 = sphi %s1069_s13, %s1397_s13   ;;  %s1037_s12 = sphi %s1067_s12, %s1396_s12  }
   0x3   : > { %p27_p1 = scmp.ge.s32.totalorder %s25_s15, 4  ;;  %p176_p2 = scmp.lt.s32.totalorder %s1045_s14, 5 }
   0x5   : > { %s1399_s15 = smov (%p27_p1, %s25_s15), 0  ;;  %p177_p3 = pnand %p898_p0, %p176_p2 }
   0x6   : > { %p217_p4 = scmp.lt.s32.totalorder (!%p177_p3), %s1037_s12, 3 }
   0x7   : > { %180 = sbr.rel (%p177_p3) target bundleno = 287 (0x11f), region = 32 }
   0xc   : > { %s1401_s12 = smov (!%p217_p4, %s1037_s12), 3  ;;  %vm320_vm0 = vcmask 523264  }
   0xd   : > { %s972_s16 = sshll.u32 %s1401_s12, 6  ;;  %s233_s22 = scalar_lea.vmem %s1394_s2, %s1401_s12 }
   0xe   : > { %s1091_s19 = scalar_lea.vmem %s1393_s1, %s972_s16  ;;  %s971_s23 = sshll.u32 %s1401_s12, 9 }
   0xf   : > { %v315_v0 = vld [vmem:[%s1091_s19 + $0x38] sm:$0xff]  ;;  %v314_v1 = vld [vmem:[%s1091_s19 + $0x30] sm:$0xff]  ;;  %v313_v2 = vld [vmem:[%s1091_s19 + $0x28] sm:$0xff]  ;;  %s1109_s26 = scalar_lea.vmem %s1392_s0, %s971_s23  ;;  %s1253_s4 = scalar_lea.vmem %s1395_s3, %s971_s23 }
  0x10   : > { %975 = vmatpush.msra.mxu2 %v315_v0  ;;  %976 = vmatpush.msra.mxu3 %v315_v0  ;;  %v312_v3 = vld [vmem:[%s1091_s19 + $0x20] sm:$0xff]  ;;  %v311_v4 = vld [vmem:[%s1091_s19 + $0x18] sm:$0xff]  ;;  %v310_v5 = vld [vmem:[%s1091_s19 + $0x10] sm:$0xff] }
  0x11   : > { %521 = vmatpush.msra.mxu0 %v315_v0  ;;  %974 = vmatpush.msra.mxu1 %v315_v0  ;;  %v309_v6 = vld [vmem:[%s1091_s19 + $0x8] sm:$0xff]  ;;  %v308_v7 = vld [vmem:[%s1091_s19] sm:$0xff]  ;;  %v278_v16 = vld [vmem:[%s1109_s26 + $0x110] sm:$0xff] }
  0x12   : > { %978 = vmatpush.msra.mxu2 %v314_v1  ;;  %979 = vmatpush.msra.mxu3 %v314_v1  ;;  %v276_v8 = vld [vmem:[%s1109_s26 + $0x100] sm:$0xff]  ;;  %v277_v12 = vld [vmem:[%s1109_s26 + $0x108] sm:$0xff]  ;;  %v294_v17 = vld [vmem:[%s1109_s26 + $0x190] sm:$0xff] }
  0x13   : > { %522 = vmatpush.msra.mxu0 %v314_v1  ;;  %977 = vmatpush.msra.mxu1 %v314_v1  ;;  %v292_v9 = vld [vmem:[%s1109_s26 + $0x180] sm:$0xff]  ;;  %v293_v13 = vld [vmem:[%s1109_s26 + $0x188] sm:$0xff]  ;;  %v246_v18 = vld [vmem:[%s1109_s26 + $0x10] sm:$0xff] }
  0x14   : > { %981 = vmatpush.msra.mxu2 %v313_v2  ;;  %982 = vmatpush.msra.mxu3 %v313_v2  ;;  %v244_v10 = vld [vmem:[%s1109_s26] sm:$0xff]  ;;  %v245_v14 = vld [vmem:[%s1109_s26 + $0x8] sm:$0xff]  ;;  %v262_v19 = vld [vmem:[%s1109_s26 + $0x90] sm:$0xff] }
  0x15   : > { %523 = vmatpush.msra.mxu0 %v313_v2  ;;  %980 = vmatpush.msra.mxu1 %v313_v2  ;;  %v260_v11 = vld [vmem:[%s1109_s26 + $0x80] sm:$0xff]  ;;  %v261_v15 = vld [vmem:[%s1109_s26 + $0x88] sm:$0xff]  ;;  %v279_v20 = vld [vmem:[%s1109_s26 + $0x118] sm:$0xff] }
  0x16   : > { %984 = vmatpush.msra.mxu2 %v312_v3  ;;  %985 = vmatpush.msra.mxu3 %v312_v3  ;;  %v295_v21 = vld [vmem:[%s1109_s26 + $0x198] sm:$0xff]  ;;  %v280_v24 = vld [vmem:[%s1109_s26 + $0x120] sm:$0xff]  ;;  %v281_v28 = vld [vmem:[%s1109_s26 + $0x128] sm:$0xff] }
  0x17   : > { %524 = vmatpush.msra.mxu0 %v312_v3  ;;  %983 = vmatpush.msra.mxu1 %v312_v3  ;;  %v247_v22 = vld [vmem:[%s1109_s26 + $0x18] sm:$0xff]  ;;  %v296_v25 = vld [vmem:[%s1109_s26 + $0x1a0] sm:$0xff]  ;;  %v297_v29 = vld [vmem:[%s1109_s26 + $0x1a8] sm:$0xff] }
  0x18   : > { %987 = vmatpush.msra.mxu2 %v311_v4  ;;  %988 = vmatpush.msra.mxu3 %v311_v4  ;;  %v263_v23 = vld [vmem:[%s1109_s26 + $0x98] sm:$0xff]  ;;  %v248_v26 = vld [vmem:[%s1109_s26 + $0x20] sm:$0xff]  ;;  %v249_v30 = vld [vmem:[%s1109_s26 + $0x28] sm:$0xff] }
  0x19   : > { %525 = vmatpush.msra.mxu0 %v311_v4  ;;  %986 = vmatpush.msra.mxu1 %v311_v4  ;;  %v264_v27 = vld [vmem:[%s1109_s26 + $0xa0] sm:$0xff]  ;;  %v265_v31 = vld [vmem:[%s1109_s26 + $0xa8] sm:$0xff]  ;;  %v282_v32 = vld [vmem:[%s1109_s26 + $0x130] sm:$0xff] }
  0x1a   : > { %990 = vmatpush.msra.mxu2 %v310_v5  ;;  %991 = vmatpush.msra.mxu3 %v310_v5  ;;  %v298_v33 = vld [vmem:[%s1109_s26 + $0x1b0] sm:$0xff]  ;;  %v283_v36 = vld [vmem:[%s1109_s26 + $0x138] sm:$0xff]  ;;  %v284_v40 = vld [vmem:[%s1109_s26 + $0x140] sm:$0xff] }
  0x1b   : > { %526 = vmatpush.msra.mxu0 %v310_v5  ;;  %989 = vmatpush.msra.mxu1 %v310_v5  ;;  %v250_v34 = vld [vmem:[%s1109_s26 + $0x30] sm:$0xff]  ;;  %v299_v37 = vld [vmem:[%s1109_s26 + $0x1b8] sm:$0xff]  ;;  %v300_v41 = vld [vmem:[%s1109_s26 + $0x1c0] sm:$0xff] }
  0x1c   : > { %993 = vmatpush.msra.mxu2 %v309_v6  ;;  %994 = vmatpush.msra.mxu3 %v309_v6  ;;  %v266_v35 = vld [vmem:[%s1109_s26 + $0xb0] sm:$0xff]  ;;  %v251_v38 = vld [vmem:[%s1109_s26 + $0x38] sm:$0xff]  ;;  %v252_v42 = vld [vmem:[%s1109_s26 + $0x40] sm:$0xff] }
  0x1d   : > { %527 = vmatpush.msra.mxu0 %v309_v6  ;;  %992 = vmatpush.msra.mxu1 %v309_v6  ;;  %v267_v39 = vld [vmem:[%s1109_s26 + $0xb8] sm:$0xff]  ;;  %v268_v43 = vld [vmem:[%s1109_s26 + $0xc0] sm:$0xff]  ;;  %v285_v44 = vld [vmem:[%s1109_s26 + $0x148] sm:$0xff] }
  0x1e   : > { %996 = vmatpush.msra.mxu2 %v308_v7  ;;  %997 = vmatpush.msra.mxu3 %v308_v7  ;;  %v301_v45 = vld [vmem:[%s1109_s26 + $0x1c8] sm:$0xff]  ;;  %v286_v48 = vld [vmem:[%s1109_s26 + $0x150] sm:$0xff]  ;;  %v287_v52 = vld [vmem:[%s1109_s26 + $0x158] sm:$0xff] }
  0x1f   : > { %937 = vmatmul.msk.f32.vlgmr.msra.gmra.mxu2 %vm320_vm0, %v276_v8  ;;  %953 = vmatmul.msk.f32.vlgmr.msra.gmra.mxu3 %vm320_vm0, %v292_v9  ;;  %v253_v46 = vld [vmem:[%s1109_s26 + $0x48] sm:$0xff]  ;;  %v302_v49 = vld [vmem:[%s1109_s26 + $0x1d0] sm:$0xff]  ;;  %v303_v53 = vld [vmem:[%s1109_s26 + $0x1d8] sm:$0xff] }
  0x20   : > { %528 = vmatpush.msra.mxu0 %v308_v7  ;;  %995 = vmatpush.msra.mxu1 %v308_v7  ;;  %v269_v47 = vld [vmem:[%s1109_s26 + $0xc8] sm:$0xff]  ;;  %v254_v50 = vld [vmem:[%s1109_s26 + $0x50] sm:$0xff]  ;;  %v255_v54 = vld [vmem:[%s1109_s26 + $0x58] sm:$0xff] }
  0x21   : > { %905 = vmatmul.msk.f32.vlgmr.msra.gmra.mxu0 %vm320_vm0, %v244_v10  ;;  %921 = vmatmul.msk.f32.vlgmr.msra.gmra.mxu1 %vm320_vm0, %v260_v11  ;;  %v270_v51 = vld [vmem:[%s1109_s26 + $0xd0] sm:$0xff]  ;;  %v271_v55 = vld [vmem:[%s1109_s26 + $0xd8] sm:$0xff]  ;;  %v288_v56 = vld [vmem:[%s1109_s26 + $0x160] sm:$0xff] }
  0x22   : > { %v304_v57 = vld [vmem:[%s1109_s26 + $0x1e0] sm:$0xff]  ;;  %v289_v60 = vld [vmem:[%s1109_s26 + $0x168] sm:$0xff]  ;;  %v290_v0 = vld [vmem:[%s1109_s26 + $0x170] sm:$0xff] }
  0x23   : > { %v256_v58 = vld [vmem:[%s1109_s26 + $0x60] sm:$0xff]  ;;  %v305_v61 = vld [vmem:[%s1109_s26 + $0x1e8] sm:$0xff]  ;;  %v306_v1 = vld [vmem:[%s1109_s26 + $0x1f0] sm:$0xff] }
  0x24   : > { %v272_v59 = vld [vmem:[%s1109_s26 + $0xe0] sm:$0xff]  ;;  %v257_v62 = vld [vmem:[%s1109_s26 + $0x68] sm:$0xff]  ;;  %v258_v2 = vld [vmem:[%s1109_s26 + $0x70] sm:$0xff] }
  0x25   : > { %v273_v63 = vld [vmem:[%s1109_s26 + $0xe8] sm:$0xff]  ;;  %v274_v3 = vld [vmem:[%s1109_s26 + $0xf0] sm:$0xff]  ;;  %v291_v4 = vld [vmem:[%s1109_s26 + $0x178] sm:$0xff] }
  0x26   : > { %v307_v5 = vld [vmem:[%s1109_s26 + $0x1f8] sm:$0xff]  ;;  %v1246_v8 = vld [vmem:[%s233_s22] ss:$0 sm:$0xff] }
  0x27   : > { %938 = vmatmul.msk.f32.gmra.mxu2 %vm320_vm0, %v277_v12  ;;  %954 = vmatmul.msk.f32.gmra.mxu3 %vm320_vm0, %v293_v13  ;;  %v259_v6 = vld [vmem:[%s1109_s26 + $0x78] sm:$0xff] }
  0x28   : > { %v275_v7 = vld [vmem:[%s1109_s26 + $0xf8] sm:$0xff] }
  0x29   : > { %906 = vmatmul.msk.f32.gmra.mxu0 %vm320_vm0, %v245_v14  ;;  %922 = vmatmul.msk.f32.gmra.mxu1 %vm320_vm0, %v261_v15 }
  0x2f   : > { %939 = vmatmul.msk.f32.gmra.mxu2 %vm320_vm0, %v278_v16  ;;  %955 = vmatmul.msk.f32.gmra.mxu3 %vm320_vm0, %v294_v17 }
  0x31   : > { %907 = vmatmul.msk.f32.gmra.mxu0 %vm320_vm0, %v246_v18  ;;  %923 = vmatmul.msk.f32.gmra.mxu1 %vm320_vm0, %v262_v19 }
  0x37   : > { %940 = vmatmul.msk.f32.gmra.mxu2 %vm320_vm0, %v279_v20  ;;  %956 = vmatmul.msk.f32.gmra.mxu3 %vm320_vm0, %v295_v21 }
  0x39   : > { %908 = vmatmul.msk.f32.gmra.mxu0 %vm320_vm0, %v247_v22  ;;  %924 = vmatmul.msk.f32.gmra.mxu1 %vm320_vm0, %v263_v23 }
  0x3f   : > { %941 = vmatmul.msk.f32.gmra.mxu2 %vm320_vm0, %v280_v24  ;;  %957 = vmatmul.msk.f32.gmra.mxu3 %vm320_vm0, %v296_v25 }
  0x41   : > { %909 = vmatmul.msk.f32.gmra.mxu0 %vm320_vm0, %v248_v26  ;;  %925 = vmatmul.msk.f32.gmra.mxu1 %vm320_vm0, %v264_v27 }
  0x47   : > { %942 = vmatmul.msk.f32.gmra.mxu2 %vm320_vm0, %v281_v28  ;;  %958 = vmatmul.msk.f32.gmra.mxu3 %vm320_vm0, %v297_v29 }
  0x49   : > { %910 = vmatmul.msk.f32.gmra.mxu0 %vm320_vm0, %v249_v30  ;;  %926 = vmatmul.msk.f32.gmra.mxu1 %vm320_vm0, %v265_v31 }
  0x4f   : > { %943 = vmatmul.msk.f32.gmra.mxu2 %vm320_vm0, %v282_v32  ;;  %959 = vmatmul.msk.f32.gmra.mxu3 %vm320_vm0, %v298_v33 }
  0x51   : > { %911 = vmatmul.msk.f32.gmra.mxu0 %vm320_vm0, %v250_v34  ;;  %927 = vmatmul.msk.f32.gmra.mxu1 %vm320_vm0, %v266_v35 }
  0x57   : > { %944 = vmatmul.msk.f32.gmra.mxu2 %vm320_vm0, %v283_v36  ;;  %960 = vmatmul.msk.f32.gmra.mxu3 %vm320_vm0, %v299_v37 }
  0x59   : > { %912 = vmatmul.msk.f32.gmra.mxu0 %vm320_vm0, %v251_v38  ;;  %928 = vmatmul.msk.f32.gmra.mxu1 %vm320_vm0, %v267_v39 }
  0x5f   : > { %945 = vmatmul.msk.f32.gmra.mxu2 %vm320_vm0, %v284_v40  ;;  %961 = vmatmul.msk.f32.gmra.mxu3 %vm320_vm0, %v300_v41 }
  0x61   : > { %913 = vmatmul.msk.f32.gmra.mxu0 %vm320_vm0, %v252_v42  ;;  %929 = vmatmul.msk.f32.gmra.mxu1 %vm320_vm0, %v268_v43 }
  0x67   : > { %946 = vmatmul.msk.f32.gmra.mxu2 %vm320_vm0, %v285_v44  ;;  %962 = vmatmul.msk.f32.gmra.mxu3 %vm320_vm0, %v301_v45 }
  0x69   : > { %914 = vmatmul.msk.f32.gmra.mxu0 %vm320_vm0, %v253_v46  ;;  %930 = vmatmul.msk.f32.gmra.mxu1 %vm320_vm0, %v269_v47 }
  0x6f   : > { %947 = vmatmul.msk.f32.gmra.mxu2 %vm320_vm0, %v286_v48  ;;  %963 = vmatmul.msk.f32.gmra.mxu3 %vm320_vm0, %v302_v49 }
  0x71   : > { %915 = vmatmul.msk.f32.gmra.mxu0 %vm320_vm0, %v254_v50  ;;  %931 = vmatmul.msk.f32.gmra.mxu1 %vm320_vm0, %v270_v51 }
  0x77   : > { %948 = vmatmul.msk.f32.gmra.mxu2 %vm320_vm0, %v287_v52  ;;  %964 = vmatmul.msk.f32.gmra.mxu3 %vm320_vm0, %v303_v53 }
  0x79   : > { %916 = vmatmul.msk.f32.gmra.mxu0 %vm320_vm0, %v255_v54  ;;  %932 = vmatmul.msk.f32.gmra.mxu1 %vm320_vm0, %v271_v55 }
  0x7f   : > { %949 = vmatmul.msk.f32.gmra.mxu2 %vm320_vm0, %v288_v56  ;;  %965 = vmatmul.msk.f32.gmra.mxu3 %vm320_vm0, %v304_v57 }
  0x81   : > { %917 = vmatmul.msk.f32.gmra.mxu0 %vm320_vm0, %v256_v58  ;;  %933 = vmatmul.msk.f32.gmra.mxu1 %vm320_vm0, %v272_v59 }
  0x87   : > { %950 = vmatmul.msk.f32.gmra.mxu2 %vm320_vm0, %v289_v60  ;;  %966 = vmatmul.msk.f32.gmra.mxu3 %vm320_vm0, %v305_v61 }
  0x89   : > { %918 = vmatmul.msk.f32.gmra.mxu0 %vm320_vm0, %v257_v62  ;;  %934 = vmatmul.msk.f32.gmra.mxu1 %vm320_vm0, %v273_v63 }
  0x8f   : > { %951 = vmatmul.msk.f32.gmra.mxu2 %vm320_vm0, %v290_v0  ;;  %967 = vmatmul.msk.f32.gmra.mxu3 %vm320_vm0, %v306_v1 }
  0x91   : > { %919 = vmatmul.msk.f32.gmra.mxu0 %vm320_vm0, %v258_v2  ;;  %935 = vmatmul.msk.f32.gmra.mxu1 %vm320_vm0, %v274_v3 }
  0x97   : > { %952 = vmatmul.msk.f32.gmra.mxu2 %vm320_vm0, %v291_v4  ;;  %968 = vmatmul.msk.f32.gmra.mxu3 %vm320_vm0, %v307_v5 }
  0x99   : > { %920 = vmatmul.msk.f32.gmra.mxu0 %vm320_vm0, %v259_v6  ;;  %936 = vmatmul.msk.f32.gmra.mxu1 %vm320_vm0, %v275_v7 }
  0x9e   : > { %v530_v9 = vpop.f32.mrf.mxu0  ;;  %v578_v10 = vpop.f32.mrf.mxu1 }
  0x9f   : > { %v531_v11 = vadd.f32 %v1246_v8, %v530_v9  ;;  %v579_v12 = vadd.f32 %v1246_v8, %v578_v10 }
  0xa1   : > { %722 = vst [vmem:[%s1253_s4] sm:$0xff] %v531_v11 }
  0xa2   : > { %738 = vst [vmem:[%s1253_s4 + $0x80] sm:$0xff] %v579_v12  ;;  %v626_v13 = vpop.f32.mrf.mxu2  ;;  %v674_v14 = vpop.f32.mrf.mxu3 }
  0xa3   : > { %v627_v15 = vadd.f32 %v1246_v8, %v626_v13  ;;  %v675_v16 = vadd.f32 %v1246_v8, %v674_v14 }
  0xa5   : > { %754 = vst [vmem:[%s1253_s4 + $0x100] sm:$0xff] %v627_v15 }
  0xa6   : > { %770 = vst [vmem:[%s1253_s4 + $0x180] sm:$0xff] %v675_v16  ;;  %v533_v17 = vpop.f32.mrf.mxu0  ;;  %v581_v18 = vpop.f32.mrf.mxu1 }
  0xa7   : > { %v534_v19 = vadd.f32 %v1246_v8, %v533_v17  ;;  %v582_v20 = vadd.f32 %v1246_v8, %v581_v18 }
  0xa9   : > { %723 = vst [vmem:[%s1253_s4 + $0x8] sm:$0xff] %v534_v19 }
  0xaa   : > { %739 = vst [vmem:[%s1253_s4 + $0x88] sm:$0xff] %v582_v20  ;;  %v629_v21 = vpop.f32.mrf.mxu2  ;;  %v677_v22 = vpop.f32.mrf.mxu3 }
  0xab   : > { %v630_v23 = vadd.f32 %v1246_v8, %v629_v21  ;;  %v678_v24 = vadd.f32 %v1246_v8, %v677_v22 }
  0xad   : > { %755 = vst [vmem:[%s1253_s4 + $0x108] sm:$0xff] %v630_v23 }
  0xae   : > { %771 = vst [vmem:[%s1253_s4 + $0x188] sm:$0xff] %v678_v24  ;;  %v536_v25 = vpop.f32.mrf.mxu0  ;;  %v584_v26 = vpop.f32.mrf.mxu1 }
  0xaf   : > { %v537_v27 = vadd.f32 %v1246_v8, %v536_v25  ;;  %v585_v28 = vadd.f32 %v1246_v8, %v584_v26 }
  0xb1   : > { %724 = vst [vmem:[%s1253_s4 + $0x10] sm:$0xff] %v537_v27 }
  0xb2   : > { %740 = vst [vmem:[%s1253_s4 + $0x90] sm:$0xff] %v585_v28  ;;  %v632_v29 = vpop.f32.mrf.mxu2  ;;  %v680_v30 = vpop.f32.mrf.mxu3 }
  0xb3   : > { %v633_v31 = vadd.f32 %v1246_v8, %v632_v29  ;;  %v681_v32 = vadd.f32 %v1246_v8, %v680_v30 }
  0xb5   : > { %756 = vst [vmem:[%s1253_s4 + $0x110] sm:$0xff] %v633_v31 }
  0xb6   : > { %772 = vst [vmem:[%s1253_s4 + $0x190] sm:$0xff] %v681_v32  ;;  %v539_v33 = vpop.f32.mrf.mxu0  ;;  %v587_v34 = vpop.f32.mrf.mxu1 }
  0xb7   : > { %v540_v35 = vadd.f32 %v1246_v8, %v539_v33  ;;  %v588_v36 = vadd.f32 %v1246_v8, %v587_v34 }
  0xb9   : > { %725 = vst [vmem:[%s1253_s4 + $0x18] sm:$0xff] %v540_v35 }
  0xba   : > { %741 = vst [vmem:[%s1253_s4 + $0x98] sm:$0xff] %v588_v36  ;;  %v635_v37 = vpop.f32.mrf.mxu2  ;;  %v683_v38 = vpop.f32.mrf.mxu3 }
  0xbb   : > { %v636_v39 = vadd.f32 %v1246_v8, %v635_v37  ;;  %v684_v40 = vadd.f32 %v1246_v8, %v683_v38 }
  0xbd   : > { %757 = vst [vmem:[%s1253_s4 + $0x118] sm:$0xff] %v636_v39 }
  0xbe   : > { %773 = vst [vmem:[%s1253_s4 + $0x198] sm:$0xff] %v684_v40  ;;  %v542_v41 = vpop.f32.mrf.mxu0  ;;  %v590_v42 = vpop.f32.mrf.mxu1 }
  0xbf   : > { %v543_v43 = vadd.f32 %v1246_v8, %v542_v41  ;;  %v591_v44 = vadd.f32 %v1246_v8, %v590_v42 }
  0xc1   : > { %726 = vst [vmem:[%s1253_s4 + $0x20] sm:$0xff] %v543_v43 }
  0xc2   : > { %742 = vst [vmem:[%s1253_s4 + $0xa0] sm:$0xff] %v591_v44  ;;  %v638_v45 = vpop.f32.mrf.mxu2  ;;  %v686_v46 = vpop.f32.mrf.mxu3 }
  0xc3   : > { %v639_v47 = vadd.f32 %v1246_v8, %v638_v45  ;;  %v687_v48 = vadd.f32 %v1246_v8, %v686_v46 }
  0xc5   : > { %758 = vst [vmem:[%s1253_s4 + $0x120] sm:$0xff] %v639_v47 }
  0xc6   : > { %774 = vst [vmem:[%s1253_s4 + $0x1a0] sm:$0xff] %v687_v48  ;;  %v545_v49 = vpop.f32.mrf.mxu0  ;;  %v593_v50 = vpop.f32.mrf.mxu1 }
  0xc7   : > { %v546_v51 = vadd.f32 %v1246_v8, %v545_v49  ;;  %v594_v52 = vadd.f32 %v1246_v8, %v593_v50 }
  0xc9   : > { %727 = vst [vmem:[%s1253_s4 + $0x28] sm:$0xff] %v546_v51 }
  0xca   : > { %743 = vst [vmem:[%s1253_s4 + $0xa8] sm:$0xff] %v594_v52  ;;  %v641_v53 = vpop.f32.mrf.mxu2  ;;  %v689_v54 = vpop.f32.mrf.mxu3 }
  0xcb   : > { %v642_v55 = vadd.f32 %v1246_v8, %v641_v53  ;;  %v690_v56 = vadd.f32 %v1246_v8, %v689_v54 }
  0xcd   : > { %759 = vst [vmem:[%s1253_s4 + $0x128] sm:$0xff] %v642_v55 }
  0xce   : > { %775 = vst [vmem:[%s1253_s4 + $0x1a8] sm:$0xff] %v690_v56  ;;  %v548_v57 = vpop.f32.mrf.mxu0  ;;  %v596_v58 = vpop.f32.mrf.mxu1 }
  0xcf   : > { %v549_v59 = vadd.f32 %v1246_v8, %v548_v57  ;;  %v597_v60 = vadd.f32 %v1246_v8, %v596_v58 }
  0xd1   : > { %728 = vst [vmem:[%s1253_s4 + $0x30] sm:$0xff] %v549_v59 }
  0xd2   : > { %744 = vst [vmem:[%s1253_s4 + $0xb0] sm:$0xff] %v597_v60  ;;  %v644_v61 = vpop.f32.mrf.mxu2  ;;  %v692_v62 = vpop.f32.mrf.mxu3 }
  0xd3   : > { %v645_v63 = vadd.f32 %v1246_v8, %v644_v61  ;;  %v693_v0 = vadd.f32 %v1246_v8, %v692_v62 }
  0xd5   : > { %760 = vst [vmem:[%s1253_s4 + $0x130] sm:$0xff] %v645_v63 }
  0xd6   : > { %776 = vst [vmem:[%s1253_s4 + $0x1b0] sm:$0xff] %v693_v0  ;;  %v551_v1 = vpop.f32.mrf.mxu0  ;;  %v599_v2 = vpop.f32.mrf.mxu1 }
  0xd7   : > { %v552_v3 = vadd.f32 %v1246_v8, %v551_v1  ;;  %v600_v4 = vadd.f32 %v1246_v8, %v599_v2 }
  0xd9   : > { %729 = vst [vmem:[%s1253_s4 + $0x38] sm:$0xff] %v552_v3 }
  0xda   : > { %745 = vst [vmem:[%s1253_s4 + $0xb8] sm:$0xff] %v600_v4  ;;  %v647_v5 = vpop.f32.mrf.mxu2  ;;  %v695_v6 = vpop.f32.mrf.mxu3 }
  0xdb   : > { %v648_v7 = vadd.f32 %v1246_v8, %v647_v5  ;;  %v696_v9 = vadd.f32 %v1246_v8, %v695_v6 }
  0xdd   : > { %761 = vst [vmem:[%s1253_s4 + $0x138] sm:$0xff] %v648_v7 }
  0xde   : > { %777 = vst [vmem:[%s1253_s4 + $0x1b8] sm:$0xff] %v696_v9  ;;  %v554_v10 = vpop.f32.mrf.mxu0  ;;  %v602_v11 = vpop.f32.mrf.mxu1 }
  0xdf   : > { %v555_v12 = vadd.f32 %v1246_v8, %v554_v10  ;;  %v603_v13 = vadd.f32 %v1246_v8, %v602_v11 }
  0xe1   : > { %730 = vst [vmem:[%s1253_s4 + $0x40] sm:$0xff] %v555_v12 }
  0xe2   : > { %746 = vst [vmem:[%s1253_s4 + $0xc0] sm:$0xff] %v603_v13  ;;  %v650_v14 = vpop.f32.mrf.mxu2  ;;  %v698_v15 = vpop.f32.mrf.mxu3 }
  0xe3   : > { %v651_v16 = vadd.f32 %v1246_v8, %v650_v14  ;;  %v699_v17 = vadd.f32 %v1246_v8, %v698_v15 }
  0xe5   : > { %762 = vst [vmem:[%s1253_s4 + $0x140] sm:$0xff] %v651_v16 }
  0xe6   : > { %778 = vst [vmem:[%s1253_s4 + $0x1c0] sm:$0xff] %v699_v17  ;;  %v557_v18 = vpop.f32.mrf.mxu0  ;;  %v605_v19 = vpop.f32.mrf.mxu1 }
  0xe7   : > { %v558_v20 = vadd.f32 %v1246_v8, %v557_v18  ;;  %v606_v21 = vadd.f32 %v1246_v8, %v605_v19 }
  0xe9   : > { %731 = vst [vmem:[%s1253_s4 + $0x48] sm:$0xff] %v558_v20 }
  0xea   : > { %747 = vst [vmem:[%s1253_s4 + $0xc8] sm:$0xff] %v606_v21  ;;  %v653_v22 = vpop.f32.mrf.mxu2  ;;  %v701_v23 = vpop.f32.mrf.mxu3 }
  0xeb   : > { %v654_v24 = vadd.f32 %v1246_v8, %v653_v22  ;;  %v702_v25 = vadd.f32 %v1246_v8, %v701_v23 }
  0xed   : > { %763 = vst [vmem:[%s1253_s4 + $0x148] sm:$0xff] %v654_v24 }
  0xee   : > { %779 = vst [vmem:[%s1253_s4 + $0x1c8] sm:$0xff] %v702_v25  ;;  %v560_v26 = vpop.f32.mrf.mxu0  ;;  %v608_v27 = vpop.f32.mrf.mxu1 }
  0xef   : > { %v561_v28 = vadd.f32 %v1246_v8, %v560_v26  ;;  %v609_v29 = vadd.f32 %v1246_v8, %v608_v27 }
  0xf1   : > { %732 = vst [vmem:[%s1253_s4 + $0x50] sm:$0xff] %v561_v28 }
  0xf2   : > { %748 = vst [vmem:[%s1253_s4 + $0xd0] sm:$0xff] %v609_v29  ;;  %v656_v30 = vpop.f32.mrf.mxu2  ;;  %v704_v31 = vpop.f32.mrf.mxu3 }
  0xf3   : > { %v657_v32 = vadd.f32 %v1246_v8, %v656_v30  ;;  %v705_v33 = vadd.f32 %v1246_v8, %v704_v31 }
  0xf5   : > { %764 = vst [vmem:[%s1253_s4 + $0x150] sm:$0xff] %v657_v32 }
  0xf6   : > { %780 = vst [vmem:[%s1253_s4 + $0x1d0] sm:$0xff] %v705_v33  ;;  %v563_v34 = vpop.f32.mrf.mxu0  ;;  %v611_v35 = vpop.f32.mrf.mxu1 }
  0xf7   : > { %v564_v36 = vadd.f32 %v1246_v8, %v563_v34  ;;  %v612_v37 = vadd.f32 %v1246_v8, %v611_v35 }
  0xf9   : > { %733 = vst [vmem:[%s1253_s4 + $0x58] sm:$0xff] %v564_v36 }
  0xfa   : > { %749 = vst [vmem:[%s1253_s4 + $0xd8] sm:$0xff] %v612_v37  ;;  %v659_v38 = vpop.f32.mrf.mxu2  ;;  %v707_v39 = vpop.f32.mrf.mxu3 }
  0xfb   : > { %v660_v40 = vadd.f32 %v1246_v8, %v659_v38  ;;  %v708_v41 = vadd.f32 %v1246_v8, %v707_v39 }
  0xfd   : > { %765 = vst [vmem:[%s1253_s4 + $0x158] sm:$0xff] %v660_v40 }
  0xfe   : > { %781 = vst [vmem:[%s1253_s4 + $0x1d8] sm:$0xff] %v708_v41  ;;  %v566_v42 = vpop.f32.mrf.mxu0  ;;  %v614_v43 = vpop.f32.mrf.mxu1 }
  0xff   : > { %v567_v44 = vadd.f32 %v1246_v8, %v566_v42  ;;  %v615_v45 = vadd.f32 %v1246_v8, %v614_v43 }
 0x101   : > { %734 = vst [vmem:[%s1253_s4 + $0x60] sm:$0xff] %v567_v44 }
 0x102   : > { %750 = vst [vmem:[%s1253_s4 + $0xe0] sm:$0xff] %v615_v45  ;;  %v662_v46 = vpop.f32.mrf.mxu2  ;;  %v710_v47 = vpop.f32.mrf.mxu3 }
 0x103   : > { %v663_v48 = vadd.f32 %v1246_v8, %v662_v46  ;;  %v711_v49 = vadd.f32 %v1246_v8, %v710_v47 }
 0x105   : > { %766 = vst [vmem:[%s1253_s4 + $0x160] sm:$0xff] %v663_v48 }
 0x106   : > { %782 = vst [vmem:[%s1253_s4 + $0x1e0] sm:$0xff] %v711_v49  ;;  %v569_v50 = vpop.f32.mrf.mxu0  ;;  %v617_v51 = vpop.f32.mrf.mxu1 }
 0x107   : > { %v570_v52 = vadd.f32 %v1246_v8, %v569_v50  ;;  %v618_v53 = vadd.f32 %v1246_v8, %v617_v51 }
 0x109   : > { %735 = vst [vmem:[%s1253_s4 + $0x68] sm:$0xff] %v570_v52 }
 0x10a   : > { %751 = vst [vmem:[%s1253_s4 + $0xe8] sm:$0xff] %v618_v53  ;;  %v665_v54 = vpop.f32.mrf.mxu2  ;;  %v713_v55 = vpop.f32.mrf.mxu3 }
 0x10b   : > { %v666_v56 = vadd.f32 %v1246_v8, %v665_v54  ;;  %v714_v57 = vadd.f32 %v1246_v8, %v713_v55 }
 0x10d   : > { %767 = vst [vmem:[%s1253_s4 + $0x168] sm:$0xff] %v666_v56 }
 0x10e   : > { %783 = vst [vmem:[%s1253_s4 + $0x1e8] sm:$0xff] %v714_v57  ;;  %v572_v58 = vpop.f32.mrf.mxu0  ;;  %v620_v59 = vpop.f32.mrf.mxu1 }
 0x10f   : > { %v573_v60 = vadd.f32 %v1246_v8, %v572_v58  ;;  %v621_v61 = vadd.f32 %v1246_v8, %v620_v59 }
 0x111   : > { %736 = vst [vmem:[%s1253_s4 + $0x70] sm:$0xff] %v573_v60 }
 0x112   : > { %752 = vst [vmem:[%s1253_s4 + $0xf0] sm:$0xff] %v621_v61  ;;  %v668_v62 = vpop.f32.mrf.mxu2  ;;  %v716_v63 = vpop.f32.mrf.mxu3 }
 0x113   : > { %v669_v0 = vadd.f32 %v1246_v8, %v668_v62  ;;  %v717_v1 = vadd.f32 %v1246_v8, %v716_v63 }
 0x115   : > { %768 = vst [vmem:[%s1253_s4 + $0x170] sm:$0xff] %v669_v0 }
 0x116   : > { %784 = vst [vmem:[%s1253_s4 + $0x1f0] sm:$0xff] %v717_v1  ;;  %v575_v2 = vpop.f32.mrf.mxu0  ;;  %v623_v3 = vpop.f32.mrf.mxu1 }
 0x117   : > { %v576_v4 = vadd.f32 %v1246_v8, %v575_v2  ;;  %v624_v5 = vadd.f32 %v1246_v8, %v623_v3 }
 0x119   : > { %737 = vst [vmem:[%s1253_s4 + $0x78] sm:$0xff] %v576_v4 }
 0x11a   : > { %753 = vst [vmem:[%s1253_s4 + $0xf8] sm:$0xff] %v624_v5  ;;  %v671_v6 = vpop.f32.mrf.mxu2  ;;  %v719_v7 = vpop.f32.mrf.mxu3 }
 0x11b   : > { %v672_v9 = vadd.f32 %v1246_v8, %v671_v6  ;;  %v720_v10 = vadd.f32 %v1246_v8, %v719_v7 }
 0x11d   : > { %769 = vst [vmem:[%s1253_s4 + $0x178] sm:$0xff] %v672_v9 }
 0x11e   : > { %785 = vst [vmem:[%s1253_s4 + $0x1f8] sm:$0xff] %v720_v10 }
 0x11f PF: > { %s13_s14 = sadd.s32 1, %s1045_s14   ;;  %s1396_s12 = smov %s1041_s13 }
 0x120   : > { %p10_p5 = scmp.ge.s32.totalorder %s13_s14, 6   ;;  %s1397_s13 = smov %s1399_s15 }
 0x122   :  { %12 = sbr.rel (!%p10_p5) target bundleno = 2 (0x2), region = 68 }

</bundles_post_ra>
